<compile_context>
chip_gen: v7x
topology: tpu7x:2x2x1
jax: 0.10.0
libtpu: 0.0.40
codegen_flags: <defaults>
</compile_context>

<pallas_src>
import functools

import jax
import jax.numpy as jnp
import numpy as np
from jax.experimental import pallas as pl
from jax.experimental.pallas import tpu as pltpu

# Small, module-consistent shapes for the synthesized "custom" net.
N, CIN, H, W = 2, 4, 16, 16      # batch, in-channels, spatial
C1, C2 = 8, 8                    # conv1 / conv2 output channels
K = 3                            # 3x3 kernels, stride 1, SAME padding
PCOLS = 256                      # packed parameter-slab lane width


# ---------------------------------------------------------------------------
# One-time build probe: resolve the pltpu.roll direction convention statically
# so the hot kernel emits exactly one roll per tap (no runtime probe/select).
# ---------------------------------------------------------------------------
def _roll_probe_kernel(x_ref, o_ref):
    o_ref[...] = pltpu.roll(x_ref[...], 1, axis=1)


@functools.lru_cache(maxsize=None)
def _roll_matches_jnp():
    x = jnp.arange(8 * 128, dtype=jnp.float32).reshape(8, 128)
    y = pl.pallas_call(
        _roll_probe_kernel,
        out_shape=jax.ShapeDtypeStruct((8, 128), jnp.float32),
    )(x)
    return bool(jnp.array_equal(y, jnp.roll(x, 1, axis=1)))


# ---------------------------------------------------------------------------
# One-time parameter packing (hoisted out of the forward; reused across calls).
# ---------------------------------------------------------------------------
def prepare_params(params, batch):
    """Pack conv weights/biases into a single (2, batch*C, PCOLS) f32 slab.

    Weights are stored as batch-block-diagonal im2col matrices
    (row = b*Cout + o, col = tap*(batch*Cin) + b*Cin + c) so one MXU dot per
    layer covers the whole batch in the kernel's (batch, channel)-on-sublanes
    layout.  The bias sits in the last lane of each layer's slab.  Depends on
    the (fixed) batch size; recompute if the batch changes.
    """
    w1, b1, w2, b2 = params
    assert w1.shape[2:] == (K, K) and w2.shape[2:] == (K, K)
    c1, c2 = w1.shape[0], w2.shape[0]
    rows = batch * max(c1, c2)

    def pack_layer(wgt, bias):
        cout, cin = wgt.shape[0], wgt.shape[1]
        # PyTorch (Cout, Cin, kh, kw) -> (K*K, Cout, Cin), tap t = kh*K + kw.
        wt = jnp.transpose(wgt, (2, 3, 0, 1)).reshape(K * K, cout, cin)
        eye = jnp.eye(batch, dtype=jnp.float32)
        # blk[a, o, t, b, c] = wt[t, o, c] * (a == b)
        blk = jnp.einsum("ab,toc->aotbc", eye, wt.astype(jnp.float32))
        blk = blk.reshape(batch * cout, K * K * batch * cin)
        wcols = blk.shape[1]
        assert wcols <= PCOLS - 1
        layer = jnp.zeros((rows, PCOLS), jnp.float32)
        layer = layer.at[: batch * cout, :wcols].set(blk)
        layer = layer.at[: batch * cout, PCOLS - 1].set(
            jnp.tile(bias.astype(jnp.float32), batch))
        return layer

    return jnp.stack([pack_layer(w1, b1), pack_layer(w2, b2)], axis=0)


# ---------------------------------------------------------------------------
# Fused kernel: 2 x (3x3 SAME conv + ReLU), whole batch in one VMEM block.
# ---------------------------------------------------------------------------
def _make_kernel(n, cin, h, w, cmid, roll_like_jnp):
    hw = h * w
    r_in = n * cin                 # input rows  (row = b*cin + c)
    r_mid = n * cmid               # hidden/output rows
    wc1 = K * K * r_in             # layer-1 contraction width
    wc2 = K * K * r_mid            # layer-2 contraction width

    taps = []                      # static (dy, dx, roll amount) per tap
    for kh in range(K):
        for kw in range(K):
            dy, dx = kh - 1, kw - 1
            s = dy * w + dx        # flattened source offset inside one image
            amt = ((-s) % hw) if roll_like_jnp else (s % hw)
            taps.append((dy, dx, amt))

    def kernel(x_ref, p_ref, o_ref):
        # Pixel coords along the lane axis + the 9 SAME-padding masks:
        # computed once, reused by both layers.  Lanes span a single image
        # (HW), so a roll can never mix batches.
        lane = jax.lax.broadcasted_iota(jnp.int32, (1, hw), 1)
        xc = lane % w
        yc = lane // w
        masks = []
        for dy, dx, _ in taps:
            valid = ((xc + dx >= 0) & (xc + dx < w) &
                     (yc + dy >= 0) & (yc + dy < h))
            masks.append(valid.astype(jnp.float32))

        def conv_relu(act, wmat, bias):
            # im2col stack along the contraction (sublane) axis; each tap is a
            # multiple-of-8-row piece so the concat is vreg-aligned and the
            # whole layer reduces to ONE MXU dot.
            pieces = []
            for t, (_, _, amt) in enumerate(taps):
                shifted = act if amt == 0 else pltpu.roll(act, amt, axis=1)
                pieces.append(shifted * masks[t])
            stack = jnp.concatenate(pieces, axis=0)
            acc = jnp.dot(wmat, stack, preferred_element_type=jnp.float32)
            return jnp.maximum(acc + bias, 0.0)      # bias folded pre-ReLU

        act0 = x_ref[...]                                          # (r_in, hw)
        act1 = conv_relu(act0, p_ref[0, :, 0:wc1],
                         p_ref[0, :, PCOLS - 1:PCOLS])             # (r_mid, hw)
        act2 = conv_relu(act1, p_ref[1, :, 0:wc2],
                         p_ref[1, :, PCOLS - 1:PCOLS])             # (r_mid, hw)
        o_ref[...] = act2                                          # lane-dense

    return kernel


def custom_net_forward(x_nchw, param_slab):
    """Forward of custom_net: x -> self.custom(x).  NCHW in, NCHW out."""
    n, cin, h, w = x_nchw.shape
    hw = h * w
    rows = param_slab.shape[1]
    assert rows % n == 0
    c_out = rows // n

    # Free, contiguous reshape only — no transposes around the kernel.
    x_in = x_nchw.reshape(n * cin, hw).astype(jnp.float32)

    kernel = _make_kernel(n, cin, h, w, c_out, _roll_matches_jnp())
    flops = 2 * hw * rows * (K * K * n * cin) + 2 * hw * rows * (K * K * rows)
    bytes_accessed = 4 * (int(x_in.size) + int(param_slab.size) + rows * hw)

    out = pl.pallas_call(
        kernel,
        out_shape=jax.ShapeDtypeStruct((rows, hw), jnp.float32),
        grid_spec=pltpu.PrefetchScalarGridSpec(
            num_scalar_prefetch=0,
            grid=(1,),                       # single block: whole net in VMEM
            in_specs=[
                pl.BlockSpec((n * cin, hw), lambda i: (0, 0)),
                pl.BlockSpec(param_slab.shape, lambda i: (0, 0, 0)),
            ],
            out_specs=pl.BlockSpec((rows, hw), lambda i: (0, 0)),
        ),
        compiler_params=pltpu.CompilerParams(
            dimension_semantics=("arbitrary",)),   # no cross-TC split (~2 MFLOP)
        cost_estimate=pl.CostEstimate(
            flops=flops, transcendentals=0, bytes_accessed=bytes_accessed),
    )(x_in, param_slab)

    # (N*C2, HW) -> NCHW: free contiguous reshape.
    return out.reshape(n, c_out, h, w)


# ---------------------------------------------------------------------------
# Pure-JAX reference (lax conv) + deterministic parameter init.
# ---------------------------------------------------------------------------
def _ref_forward(x, params):
    w1, b1, w2, b2 = params

    def conv(z, wgt, b):
        dn = jax.lax.conv_dimension_numbers(z.shape, wgt.shape,
                                            ("NCHW", "OIHW", "NCHW"))
        y = jax.lax.conv_general_dilated(z, wgt, (1, 1), "SAME",
                                         dimension_numbers=dn)
        return jnp.maximum(y + b.reshape(1, -1, 1, 1), 0.0)

    return conv(conv(x, w1, b1), w2, b2)


def init_params(key):
    k1, k2, k3, k4 = jax.random.split(key, 4)
    w1 = jax.random.normal(k1, (C1, CIN, K, K), jnp.float32) * 0.1
    b1 = jax.random.normal(k2, (C1,), jnp.float32) * 0.1
    w2 = jax.random.normal(k3, (C2, C1, K, K), jnp.float32) * 0.1
    b2 = jax.random.normal(k4, (C2,), jnp.float32) * 0.1
    return (w1, b1, w2, b2)


if __name__ == "__main__":
    key = jax.random.PRNGKey(0)
    kx, kp = jax.random.split(key)
    x = jax.random.normal(kx, (N, CIN, H, W), jnp.float32)
    params = init_params(kp)

    # One-time prep (hoisted out of the per-iteration forward).
    param_slab = prepare_params(params, N)

    out = jax.block_until_ready(custom_net_forward(x, param_slab))

    ref = _ref_forward(x, params)
    # Tolerance covers default (bf16-pass) MXU precision on both the kernel
    # and the lax-conv reference with differing accumulation order.
    np.testing.assert_allclose(np.asarray(out), np.asarray(ref),
                               rtol=1e-3, atol=1e-3)
    print("KERNEL_OK")
</pallas_src>

<mosaic_0001>
module attributes {stable_mosaic.version = 11 : i64} {
  func.func @_roll_probe_kernel(%arg0: memref<8x128xf32, #tpu.memory_space<vmem>>, %arg1: memref<8x128xf32, #tpu.memory_space<vmem>>) attributes {dimension_semantics = [], scalar_prefetch = 0 : i64, scratch_operands = 0 : i64, tpu.core_type = #tpu.core_type<tc>} {
    %c0 = arith.constant 0 : index
    %c0_0 = arith.constant 0 : index
    %0 = vector.load %arg0[%c0, %c0_0] : memref<8x128xf32, #tpu.memory_space<vmem>>, vector<8x128xf32>
    %c1_i32 = arith.constant 1 : i32
    %1 = tpu.dynamic_rotate %0 by %c1_i32 dim 1 : vector<8x128xf32>, i32 -> vector<8x128xf32>
    %c0_1 = arith.constant 0 : index
    %c0_2 = arith.constant 0 : index
    %2 = vector.load %arg1[%c0_1, %c0_2] : memref<8x128xf32, #tpu.memory_space<vmem>>, vector<8x128xf32>
    tpu.vector_store %arg1[%c0_1, %c0_2], %1 {strides = array<i32>} : memref<8x128xf32, #tpu.memory_space<vmem>>, vector<8x128xf32>,
    return
  }
}

</mosaic_0001>

<bundles_post_ra>
// kernel: tpu_custom_call.1
= control target key start
LH: loop header
LB: loop body
LE: loop exit
PB: predicated region body
PF: predicated region fallthrough
CT: control target
= control target key end

     0   :  { %6 = vsyncpa [#allocation3], 0  ;;  %s128_s0 = inlined_call_operand.hbm [shape: f32[8,128], index: 0, kind: input, shape index: {}]   ;;  %s129_s1 = inlined_call_operand.hbm [shape: f32[8,128], index: 1, kind: output, shape index: {}]  }
   0x1   :  { %7 = vsyncpa [#allocation4], 0  ;;  %s91_s6 = smov [#allocation2]   ;;  %s43_s10 = scalar_lea.hbm %s128_s0, 128 }
   0x2   :  { %s14_s7 = sshll.u32 %s91_s6, 4  ;;  %p44_p0 = scmp.ne.s32.totalorder %s128_s0, %s43_s10  ;;  %s15_s7 = int_to_ptr.vmem [resolvable:$true] %s14_s7 }
   0x3   :  { %p47_p1 = scmp.lt.u32.totalorder %s43_s10, %s128_s0 }
   0x5   :  { %p49_p2 = pnand %p47_p1, %p44_p0 }
   0x7   :  { %52 = shalt.err (!%p49_p2)
}
   0x8   :  { %s53_s15 = scalar_lea.vmem %s15_s7, 128  ;;  %p58_p4 = scmp.lt.s32.totalorder %s15_s7, %s15_s7 }
   0x9   :  { %p54_p3 = scmp.ne.s32.totalorder %s15_s7, %s53_s15  ;;  %p59_p5 = scmp.lt.s32.totalorder %s53_s15, %s53_s15 }
   0xb   :  { %p60_p6 = por %p59_p5, %p58_p4 }
   0xd   :  { %p61_p7 = pnand %p60_p6, %p54_p3 }
   0xf   :  { %64 = shalt.err (!%p61_p7)
}
  0x10   :  { %17 = dma.hbm_to_vmem [thread:$0]  %s128_s0, 128, %s15_s7, [#allocation3]  }
  0x11   :  { %87 = dma.done.wait [#allocation3], 128  }
  0x12   :  { %88 = vsyncadd [#allocation3], 4294967168  ;;  %v21_v0 = vld [vmem:[#allocation2] sm:$0xff]  ;;  %s92_s18 = smov 1   ;;  %s93_s19 = smov [#allocation5]  }
  0x13   :  { %22 = vrot.lane.b32.xlu0 %v21_v0, %s92_s18  ;;  %s31_s20 = sshll.u32 %s93_s19, 4  ;;  %s32_s20 = int_to_ptr.vmem [resolvable:$true] %s31_s20 }
  0x14   :  { %s65_s21 = scalar_lea.vmem %s32_s20, 128  ;;  %p70_p9 = scmp.lt.s32.totalorder %s32_s20, %s32_s20 }
  0x15   :  { %p66_p8 = scmp.ne.s32.totalorder %s32_s20, %s65_s21  ;;  %p71_p10 = scmp.lt.s32.totalorder %s65_s21, %s65_s21 }
  0x17   :  { %p72_p11 = por %p71_p10, %p70_p9 }
  0x19   :  { %p73_p12 = pnand %p72_p11, %p66_p8 }
  0x85   :  { %v23_v1 = vpop.permute.xlu0 %22 }
  0x86   :  { %24 = vst [vmem:[#allocation5] sm:$0xff] %v23_v1 }
  0x87   :  { %76 = shalt.err (!%p73_p12)
}
  0x88   :  { %s77_s0 = scalar_lea.hbm %s129_s1, 128 }
  0x89   :  { %p78_p13 = scmp.ne.s32.totalorder %s129_s1, %s77_s0  ;;  %p81_p0 = scmp.lt.u32.totalorder %s77_s0, %s129_s1 }
  0x8b   :  { %p83_p1 = pnand %p81_p0, %p78_p13 }
  0x8d   :  { %86 = shalt.err (!%p83_p1)
}
  0x8e   :  { %34 = dma.vmem_to_hbm [thread:$0]  %s32_s20, 128, %s129_s1, [#allocation4]  }
  0x8f   :  { %89 = dma.done.wait [#allocation4], 128  }
  0x90   :  { %90 = vsyncadd [#allocation4], 4294967168 }
  0x91   :  { %38 = vsyncpa [#allocation3], 1 }
  0x92   :  { %39 = vsyncpa [#allocation4], 1 }

</bundles_post_ra>
